<compile_context>
chip_gen: v7x
topology: tpu7x:2x2x1
jax: 0.10.0
libtpu: 0.0.40
codegen_flags: <defaults>
</compile_context>

<pallas_src>
import math

import jax
import jax.numpy as jnp
from jax.experimental import pallas as pl
from jax.experimental.pallas import tpu as pltpu

# Side index convention (original module imports these from its codebase).
NORTH, EAST, SOUTH, WEST = 0, 1, 2, 3
N_SIDES = 4
LN_EPS = 1e-5


def _row_shift(x, k):
    """y[r] = x[(r - k) mod n] along axis 0 (static k, cyclic within the tile).

    Wrapped / cross-board rows produced here are always zeroed by the
    neighbour-validity mask, so the wraparound content never matters.
    """
    n = x.shape[0]
    k = k % n
    if k == 0:
        return x
    return jnp.concatenate([x[n - k:], x[:n - k]], axis=0)


def _make_kernel(width, emb_dim):
    D = emb_dim
    W = width

    def kernel(x_ref, m_ref, ws_ref, wo_ref, b_ref, g_ref, bt_ref, o_ref):
        # x: (T, 4*D) -- one row per board cell, lanes = [N | E | S | W] * D.
        x = x_ref[...].astype(jnp.float32)

        # --- neighbour gather, entirely in VMEM ------------------------------
        up = _row_shift(x, W)        # token at (h-1, w)
        down = _row_shift(x, -W)     # token at (h+1, w)
        right = _row_shift(x, -1)    # token at (h, w+1)
        left = _row_shift(x, 1)      # token at (h, w-1)
        nb = jnp.concatenate(
            [
                up[:, SOUTH * D:(SOUTH + 1) * D],    # NORTH side <- upper token's SOUTH
                right[:, WEST * D:(WEST + 1) * D],   # EAST  side <- right token's WEST
                down[:, NORTH * D:(NORTH + 1) * D],  # SOUTH side <- lower token's NORTH
                left[:, EAST * D:(EAST + 1) * D],    # WEST  side <- left token's EAST
            ],
            axis=-1,
        )
        nb = nb * m_ref[...]  # zero neighbours that fall off the board

        # --- fused linear layers (block-diagonal over the 4 sides, K = 4*D) --
        h = jnp.dot(x, ws_ref[...], preferred_element_type=jnp.float32)
        h = h + jnp.dot(nb, wo_ref[...], preferred_element_type=jnp.float32)
        h = h + b_ref[...]          # (bs + bo) tiled over the 4 sides
        h = jnp.maximum(h, 0.0)     # ReLU

        # --- per-side LayerNorm over D lanes (single pass variance) ----------
        parts = []
        for s in range(N_SIDES):
            hs = h[:, s * D:(s + 1) * D]
            mu = jnp.mean(hs, axis=-1, keepdims=True)
            var = jnp.mean(hs * hs, axis=-1, keepdims=True) - mu * mu
            parts.append((hs - mu) * jax.lax.rsqrt(var + LN_EPS))
        hn = jnp.concatenate(parts, axis=-1)

        o_ref[...] = (hn * g_ref[...] + bt_ref[...]).astype(o_ref.dtype)

    return kernel


def message_passing_exter(tokens, params, *, tile_rows=1024):
    """tokens: (B, H, W, N_SIDES, D) -> (B, H, W, N_SIDES, D)."""
    B, H, W, S, D = tokens.shape
    assert S == N_SIDES
    ws, bs, wo, bo, gamma, beta = params
    F = S * D
    rpb = H * W  # board cells (rows) per board

    # --- board-aligned row tiling -------------------------------------------
    # T must be a multiple of rpb (so neighbours stay inside the tile) and of 8
    # (sublane constraint); keep >=2 grid steps when possible (v7x megacore).
    need = 8 // math.gcd(rpb, 8)
    bpt = max(1, tile_rows // rpb)
    if B >= 2:
        bpt = min(bpt, max(1, B // 2))
    else:
        bpt = 1
    bpt = max(need, (bpt // need) * need)
    n_tiles = -(-B // bpt)
    B_pad = n_tiles * bpt
    T = bpt * rpb
    n_rows = B * rpb
    n_rows_pad = B_pad * rpb

    # --- lane-dense flat view (rows = cells, lanes = 4*D) --------------------
    x2 = tokens.reshape(n_rows, F)
    if n_rows_pad != n_rows:
        x2 = jnp.pad(x2, ((0, n_rows_pad - n_rows), (0, 0)))

    # --- constants prepared once in the wrapper ------------------------------
    eye = jnp.eye(S, dtype=jnp.float32)
    ws_bd = jnp.kron(eye, ws.astype(jnp.float32))  # (4D, 4D) block-diagonal
    wo_bd = jnp.kron(eye, wo.astype(jnp.float32))
    bias = jnp.tile((bs + bo).astype(jnp.float32), S).reshape(1, F)
    gamma_c = jnp.tile(gamma.astype(jnp.float32), S).reshape(1, F)
    beta_c = jnp.tile(beta.astype(jnp.float32), S).reshape(1, F)
    # TODO(synk): for very large embedding_dim (4D*4D weights >~ a few MiB) add
    # a grid axis over the output dim / single-buffer the weights for v7x VMEM.

    # Neighbour-validity mask, segment order [NORTH, EAST, SOUTH, WEST].
    r = jnp.arange(T)
    hh = (r % rpb) // W
    ww = (r % rpb) % W
    seg_valid = [hh > 0, ww < (W - 1), hh < (H - 1), ww > 0]
    mask = jnp.concatenate(
        [jnp.broadcast_to(v[:, None], (T, D)) for v in seg_valid], axis=1
    ).astype(jnp.float32)

    row_spec = pl.BlockSpec((T, F), lambda i: (i, 0))

    def const(a):
        zeros = (0,) * a.ndim
        return pl.BlockSpec(a.shape, lambda i: zeros)

    out = pl.pallas_call(
        _make_kernel(W, D),
        out_shape=jax.ShapeDtypeStruct((n_rows_pad, F), tokens.dtype),
        grid_spec=pltpu.PrefetchScalarGridSpec(
            num_scalar_prefetch=0,
            grid=(n_rows_pad // T,),
            in_specs=[row_spec, const(mask), const(ws_bd), const(wo_bd),
                      const(bias), const(gamma_c), const(beta_c)],
            out_specs=row_spec,
        ),
        compiler_params=pltpu.CompilerParams(dimension_semantics=("parallel",)),
    )(x2, mask, ws_bd, wo_bd, bias, gamma_c, beta_c)

    if n_rows_pad != n_rows:
        out = out[:n_rows]
    return out.reshape(B, H, W, S, D)


def reference_forward(tokens, params):
    """Pure-JAX replica of the PyTorch forward, for verification."""
    ws, bs, wo, bo, gamma, beta = params
    padded = jnp.pad(tokens, ((0, 0), (1, 1), (1, 1), (0, 0), (0, 0)))
    self_t = tokens @ ws + bs
    other_t = padded @ wo + bo
    msgs = jnp.zeros_like(tokens)
    msgs = msgs.at[:, :, :, NORTH].set(self_t[:, :, :, NORTH] + other_t[:, :-2, 1:-1, SOUTH])
    msgs = msgs.at[:, :, :, SOUTH].set(self_t[:, :, :, SOUTH] + other_t[:, 2:, 1:-1, NORTH])
    msgs = msgs.at[:, :, :, EAST].set(self_t[:, :, :, EAST] + other_t[:, 1:-1, 2:, WEST])
    msgs = msgs.at[:, :, :, WEST].set(self_t[:, :, :, WEST] + other_t[:, 1:-1, :-2, EAST])
    msgs = jnp.maximum(msgs, 0.0)
    mean = jnp.mean(msgs, axis=-1, keepdims=True)
    var = jnp.mean(jnp.square(msgs - mean), axis=-1, keepdims=True)
    return (msgs - mean) * jax.lax.rsqrt(var + LN_EPS) * gamma + beta


def init_params(key, embedding_dim):
    k = jax.random.split(key, 6)
    d = embedding_dim
    ws = jax.random.normal(k[0], (d, d), jnp.float32) * 0.1   # self_linear weight (in, out)
    bs = jax.random.normal(k[1], (d,), jnp.float32) * 0.1     # self_linear bias
    wo = jax.random.normal(k[2], (d, d), jnp.float32) * 0.1   # other_linear weight (in, out)
    bo = jax.random.normal(k[3], (d,), jnp.float32) * 0.1     # other_linear bias
    gamma = 1.0 + 0.05 * jax.random.normal(k[4], (d,), jnp.float32)  # LayerNorm weight
    beta = 0.05 * jax.random.normal(k[5], (d,), jnp.float32)         # LayerNorm bias
    return ws, bs, wo, bo, gamma, beta


if __name__ == "__main__":
    B, H, W, D = 2, 4, 4, 32
    key = jax.random.PRNGKey(0)
    k_tok, k_par = jax.random.split(key)
    tokens = jax.random.normal(k_tok, (B, H, W, N_SIDES, D), jnp.float32)
    params = init_params(k_par, D)

    mp_fn = jax.jit(message_passing_exter)
    out = jax.block_until_ready(mp_fn(tokens, params))
    ref = jax.block_until_ready(reference_forward(tokens, params))

    assert out.shape == (B, H, W, N_SIDES, D)
    assert jnp.allclose(out, ref, atol=2e-4, rtol=2e-4), "mismatch vs reference"
    print("KERNEL_OK")
</pallas_src>

<mosaic_0001>
module attributes {stable_mosaic.version = 11 : i64} {
  func.func @kernel(%arg0: i32, %arg1: memref<16x128xf32, #tpu.memory_space<vmem>>, %arg2: memref<16x128xf32, #tpu.memory_space<vmem>>, %arg3: memref<128x128xf32, #tpu.memory_space<vmem>>, %arg4: memref<128x128xf32, #tpu.memory_space<vmem>>, %arg5: memref<1x128xf32, #tpu.memory_space<vmem>>, %arg6: memref<1x128xf32, #tpu.memory_space<vmem>>, %arg7: memref<1x128xf32, #tpu.memory_space<vmem>>, %arg8: memref<16x128xf32, #tpu.memory_space<vmem>>) attributes {dimension_semantics = [#tpu.dimension_semantics<parallel>], iteration_bounds = array<i64: 2>, scalar_prefetch = 0 : i64, scratch_operands = 0 : i64, tpu.core_type = #tpu.core_type<tc>, window_params = [{transform_indices = @transform_0, window_bounds = array<i64: 16, 128>}, {pipeline_mode = #tpu.pipeline_mode<synchronous>, transform_indices = @transform_1, window_bounds = array<i64: 16, 128>}, {pipeline_mode = #tpu.pipeline_mode<synchronous>, transform_indices = @transform_2, window_bounds = array<i64: 128, 128>}, {pipeline_mode = #tpu.pipeline_mode<synchronous>, transform_indices = @transform_3, window_bounds = array<i64: 128, 128>}, {pipeline_mode = #tpu.pipeline_mode<synchronous>, transform_indices = @transform_4, window_bounds = array<i64: 1, 128>}, {pipeline_mode = #tpu.pipeline_mode<synchronous>, transform_indices = @transform_5, window_bounds = array<i64: 1, 128>}, {pipeline_mode = #tpu.pipeline_mode<synchronous>, transform_indices = @transform_6, window_bounds = array<i64: 1, 128>}, {transform_indices = @transform_7, window_bounds = array<i64: 16, 128>}]} {
    %c0 = arith.constant 0 : index
    %c0_0 = arith.constant 0 : index
    %0 = vector.load %arg1[%c0, %c0_0] : memref<16x128xf32, #tpu.memory_space<vmem>>, vector<16x128xf32>
    %1 = vector.extract_strided_slice %0 {offsets = [12, 0], sizes = [4, 128], strides = [1, 1]} : vector<16x128xf32> to vector<4x128xf32>
    %2 = vector.extract_strided_slice %0 {offsets = [0, 0], sizes = [12, 128], strides = [1, 1]} : vector<16x128xf32> to vector<12x128xf32>
    %3 = tpu.concatenate %1, %2 in 0 : vector<4x128xf32>, vector<12x128xf32> -> vector<16x128xf32>
    %4 = vector.extract_strided_slice %0 {offsets = [4, 0], sizes = [12, 128], strides = [1, 1]} : vector<16x128xf32> to vector<12x128xf32>
    %5 = vector.extract_strided_slice %0 {offsets = [0, 0], sizes = [4, 128], strides = [1, 1]} : vector<16x128xf32> to vector<4x128xf32>
    %6 = tpu.concatenate %4, %5 in 0 : vector<12x128xf32>, vector<4x128xf32> -> vector<16x128xf32>
    %7 = vector.extract_strided_slice %0 {offsets = [1, 0], sizes = [15, 128], strides = [1, 1]} : vector<16x128xf32> to vector<15x128xf32>
    %8 = vector.extract_strided_slice %0 {offsets = [0, 0], sizes = [1, 128], strides = [1, 1]} : vector<16x128xf32> to vector<1x128xf32>
    %9 = tpu.concatenate %7, %8 in 0 : vector<15x128xf32>, vector<1x128xf32> -> vector<16x128xf32>
    %10 = vector.extract_strided_slice %0 {offsets = [15, 0], sizes = [1, 128], strides = [1, 1]} : vector<16x128xf32> to vector<1x128xf32>
    %11 = vector.extract_strided_slice %0 {offsets = [0, 0], sizes = [15, 128], strides = [1, 1]} : vector<16x128xf32> to vector<15x128xf32>
    %12 = tpu.concatenate %10, %11 in 0 : vector<1x128xf32>, vector<15x128xf32> -> vector<16x128xf32>
    %13 = vector.extract_strided_slice %3 {offsets = [0, 64], sizes = [16, 32], strides = [1, 1]} : vector<16x128xf32> to vector<16x32xf32>
    %14 = vector.extract_strided_slice %9 {offsets = [0, 96], sizes = [16, 32], strides = [1, 1]} : vector<16x128xf32> to vector<16x32xf32>
    %15 = vector.extract_strided_slice %6 {offsets = [0, 0], sizes = [16, 32], strides = [1, 1]} : vector<16x128xf32> to vector<16x32xf32>
    %16 = vector.extract_strided_slice %12 {offsets = [0, 32], sizes = [16, 32], strides = [1, 1]} : vector<16x128xf32> to vector<16x32xf32>
    %17 = tpu.concatenate %13, %14, %15, %16 in 1 : vector<16x32xf32>, vector<16x32xf32>, vector<16x32xf32>, vector<16x32xf32> -> vector<16x128xf32>
    %c0_1 = arith.constant 0 : index
    %c0_2 = arith.constant 0 : index
    %18 = vector.load %arg2[%c0_1, %c0_2] : memref<16x128xf32, #tpu.memory_space<vmem>>, vector<16x128xf32>
    %19 = arith.mulf %17, %18 : vector<16x128xf32>
    %c0_3 = arith.constant 0 : index
    %c0_4 = arith.constant 0 : index
    %20 = vector.load %arg3[%c0_3, %c0_4] : memref<128x128xf32, #tpu.memory_space<vmem>>, vector<128x128xf32>
    %cst = arith.constant dense<0.000000e+00> : vector<16x128xf32>
    %21 = tpu.matmul %0, %20, %cst {dimension_numbers = #tpu.dot_dimension_numbers<[1], [0], [0], [1], [0, 0, 1, 1], [], []>} : vector<16x128xf32>, vector<128x128xf32>, vector<16x128xf32> -> vector<16x128xf32>
    %c0_5 = arith.constant 0 : index
    %c0_6 = arith.constant 0 : index
    %22 = vector.load %arg4[%c0_5, %c0_6] : memref<128x128xf32, #tpu.memory_space<vmem>>, vector<128x128xf32>
    %cst_7 = arith.constant dense<0.000000e+00> : vector<16x128xf32>
    %23 = tpu.matmul %19, %22, %cst_7 {dimension_numbers = #tpu.dot_dimension_numbers<[1], [0], [0], [1], [0, 0, 1, 1], [], []>} : vector<16x128xf32>, vector<128x128xf32>, vector<16x128xf32> -> vector<16x128xf32>
    %24 = arith.addf %21, %23 : vector<16x128xf32>
    %c0_8 = arith.constant 0 : index
    %c0_9 = arith.constant 0 : index
    %25 = vector.load %arg5[%c0_8, %c0_9] : memref<1x128xf32, #tpu.memory_space<vmem>>, vector<1x128xf32>
    %26 = vector.broadcast %25 : vector<1x128xf32> to vector<16x128xf32>
    %27 = arith.addf %24, %26 : vector<16x128xf32>
    %cst_10 = arith.constant 0.000000e+00 : f32
    %28 = vector.broadcast %cst_10 : f32 to vector<16x128xf32>
    %29 = arith.maximumf %27, %28 : vector<16x128xf32>
    %30 = vector.extract_strided_slice %29 {offsets = [0, 0], sizes = [16, 32], strides = [1, 1]} : vector<16x128xf32> to vector<16x32xf32>
    %cst_11 = arith.constant dense<0.000000e+00> : vector<16xf32>
    %31 = vector.multi_reduction <add>, %30, %cst_11 [1] : vector<16x32xf32> to vector<16xf32>
    %32 = vector.shape_cast %31 : vector<16xf32> to vector<16x1xf32>
    %cst_12 = arith.constant 3.200000e+01 : f32
    %33 = vector.broadcast %cst_12 : f32 to vector<16x1xf32>
    %34 = arith.divf %32, %33 : vector<16x1xf32>
    %35 = arith.mulf %30, %30 : vector<16x32xf32>
    %cst_13 = arith.constant dense<0.000000e+00> : vector<16xf32>
    %36 = vector.multi_reduction <add>, %35, %cst_13 [1] : vector<16x32xf32> to vector<16xf32>
    %37 = vector.shape_cast %36 : vector<16xf32> to vector<16x1xf32>
    %cst_14 = arith.constant 3.200000e+01 : f32
    %38 = vector.broadcast %cst_14 : f32 to vector<16x1xf32>
    %39 = arith.divf %37, %38 : vector<16x1xf32>
    %40 = arith.mulf %34, %34 : vector<16x1xf32>
    %41 = arith.subf %39, %40 : vector<16x1xf32>
    %42 = vector.broadcast %34 : vector<16x1xf32> to vector<16x32xf32>
    %43 = arith.subf %30, %42 : vector<16x32xf32>
    %cst_15 = arith.constant 9.99999974E-6 : f32
    %44 = vector.broadcast %cst_15 : f32 to vector<16x1xf32>
    %45 = arith.addf %41, %44 : vector<16x1xf32>
    %46 = math.rsqrt %45 : vector<16x1xf32>
    %47 = vector.broadcast %46 : vector<16x1xf32> to vector<16x32xf32>
    %48 = arith.mulf %43, %47 : vector<16x32xf32>
    %49 = vector.extract_strided_slice %29 {offsets = [0, 32], sizes = [16, 32], strides = [1, 1]} : vector<16x128xf32> to vector<16x32xf32>
    %cst_16 = arith.constant dense<0.000000e+00> : vector<16xf32>
    %50 = vector.multi_reduction <add>, %49, %cst_16 [1] : vector<16x32xf32> to vector<16xf32>
    %51 = vector.shape_cast %50 : vector<16xf32> to vector<16x1xf32>
    %cst_17 = arith.constant 3.200000e+01 : f32
    %52 = vector.broadcast %cst_17 : f32 to vector<16x1xf32>
    %53 = arith.divf %51, %52 : vector<16x1xf32>
    %54 = arith.mulf %49, %49 : vector<16x32xf32>
    %cst_18 = arith.constant dense<0.000000e+00> : vector<16xf32>
    %55 = vector.multi_reduction <add>, %54, %cst_18 [1] : vector<16x32xf32> to vector<16xf32>
    %56 = vector.shape_cast %55 : vector<16xf32> to vector<16x1xf32>
    %cst_19 = arith.constant 3.200000e+01 : f32
    %57 = vector.broadcast %cst_19 : f32 to vector<16x1xf32>
    %58 = arith.divf %56, %57 : vector<16x1xf32>
    %59 = arith.mulf %53, %53 : vector<16x1xf32>
    %60 = arith.subf %58, %59 : vector<16x1xf32>
    %61 = vector.broadcast %53 : vector<16x1xf32> to vector<16x32xf32>
    %62 = arith.subf %49, %61 : vector<16x32xf32>
    %cst_20 = arith.constant 9.99999974E-6 : f32
    %63 = vector.broadcast %cst_20 : f32 to vector<16x1xf32>
    %64 = arith.addf %60, %63 : vector<16x1xf32>
    %65 = math.rsqrt %64 : vector<16x1xf32>
    %66 = vector.broadcast %65 : vector<16x1xf32> to vector<16x32xf32>
    %67 = arith.mulf %62, %66 : vector<16x32xf32>
    %68 = vector.extract_strided_slice %29 {offsets = [0, 64], sizes = [16, 32], strides = [1, 1]} : vector<16x128xf32> to vector<16x32xf32>
    %cst_21 = arith.constant dense<0.000000e+00> : vector<16xf32>
    %69 = vector.multi_reduction <add>, %68, %cst_21 [1] : vector<16x32xf32> to vector<16xf32>
    %70 = vector.shape_cast %69 : vector<16xf32> to vector<16x1xf32>
    %cst_22 = arith.constant 3.200000e+01 : f32
    %71 = vector.broadcast %cst_22 : f32 to vector<16x1xf32>
    %72 = arith.divf %70, %71 : vector<16x1xf32>
    %73 = arith.mulf %68, %68 : vector<16x32xf32>
    %cst_23 = arith.constant dense<0.000000e+00> : vector<16xf32>
    %74 = vector.multi_reduction <add>, %73, %cst_23 [1] : vector<16x32xf32> to vector<16xf32>
    %75 = vector.shape_cast %74 : vector<16xf32> to vector<16x1xf32>
    %cst_24 = arith.constant 3.200000e+01 : f32
    %76 = vector.broadcast %cst_24 : f32 to vector<16x1xf32>
    %77 = arith.divf %75, %76 : vector<16x1xf32>
    %78 = arith.mulf %72, %72 : vector<16x1xf32>
    %79 = arith.subf %77, %78 : vector<16x1xf32>
    %80 = vector.broadcast %72 : vector<16x1xf32> to vector<16x32xf32>
    %81 = arith.subf %68, %80 : vector<16x32xf32>
    %cst_25 = arith.constant 9.99999974E-6 : f32
    %82 = vector.broadcast %cst_25 : f32 to vector<16x1xf32>
    %83 = arith.addf %79, %82 : vector<16x1xf32>
    %84 = math.rsqrt %83 : vector<16x1xf32>
    %85 = vector.broadcast %84 : vector<16x1xf32> to vector<16x32xf32>
    %86 = arith.mulf %81, %85 : vector<16x32xf32>
    %87 = vector.extract_strided_slice %29 {offsets = [0, 96], sizes = [16, 32], strides = [1, 1]} : vector<16x128xf32> to vector<16x32xf32>
    %cst_26 = arith.constant dense<0.000000e+00> : vector<16xf32>
    %88 = vector.multi_reduction <add>, %87, %cst_26 [1] : vector<16x32xf32> to vector<16xf32>
    %89 = vector.shape_cast %88 : vector<16xf32> to vector<16x1xf32>
    %cst_27 = arith.constant 3.200000e+01 : f32
    %90 = vector.broadcast %cst_27 : f32 to vector<16x1xf32>
    %91 = arith.divf %89, %90 : vector<16x1xf32>
    %92 = arith.mulf %87, %87 : vector<16x32xf32>
    %cst_28 = arith.constant dense<0.000000e+00> : vector<16xf32>
    %93 = vector.multi_reduction <add>, %92, %cst_28 [1] : vector<16x32xf32> to vector<16xf32>
    %94 = vector.shape_cast %93 : vector<16xf32> to vector<16x1xf32>
    %cst_29 = arith.constant 3.200000e+01 : f32
    %95 = vector.broadcast %cst_29 : f32 to vector<16x1xf32>
    %96 = arith.divf %94, %95 : vector<16x1xf32>
    %97 = arith.mulf %91, %91 : vector<16x1xf32>
    %98 = arith.subf %96, %97 : vector<16x1xf32>
    %99 = vector.broadcast %91 : vector<16x1xf32> to vector<16x32xf32>
    %100 = arith.subf %87, %99 : vector<16x32xf32>
    %cst_30 = arith.constant 9.99999974E-6 : f32
    %101 = vector.broadcast %cst_30 : f32 to vector<16x1xf32>
    %102 = arith.addf %98, %101 : vector<16x1xf32>
    %103 = math.rsqrt %102 : vector<16x1xf32>
    %104 = vector.broadcast %103 : vector<16x1xf32> to vector<16x32xf32>
    %105 = arith.mulf %100, %104 : vector<16x32xf32>
    %106 = tpu.concatenate %48, %67, %86, %105 in 1 : vector<16x32xf32>, vector<16x32xf32>, vector<16x32xf32>, vector<16x32xf32> -> vector<16x128xf32>
    %c0_31 = arith.constant 0 : index
    %c0_32 = arith.constant 0 : index
    %107 = vector.load %arg6[%c0_31, %c0_32] : memref<1x128xf32, #tpu.memory_space<vmem>>, vector<1x128xf32>
    %108 = vector.broadcast %107 : vector<1x128xf32> to vector<16x128xf32>
    %109 = arith.mulf %106, %108 : vector<16x128xf32>
    %c0_33 = arith.constant 0 : index
    %c0_34 = arith.constant 0 : index
    %110 = vector.load %arg7[%c0_33, %c0_34] : memref<1x128xf32, #tpu.memory_space<vmem>>, vector<1x128xf32>
    %111 = vector.broadcast %110 : vector<1x128xf32> to vector<16x128xf32>
    %112 = arith.addf %109, %111 : vector<16x128xf32>
    %c0_35 = arith.constant 0 : index
    %c0_36 = arith.constant 0 : index
    %113 = vector.load %arg8[%c0_35, %c0_36] : memref<16x128xf32, #tpu.memory_space<vmem>>, vector<16x128xf32>
    tpu.vector_store %arg8[%c0_35, %c0_36], %112 {strides = array<i32>} : memref<16x128xf32, #tpu.memory_space<vmem>>, vector<16x128xf32>,
    return
  }
  func.func @transform_0(%arg0: i32) -> (i32, i32) {
    %c0_i32 = arith.constant 0 : i32
    %c0_i32_0 = arith.constant 0 : i32
    return %arg0, %c0_i32 : i32, i32
  }
  func.func @transform_1(%arg0: i32) -> (i32, i32) {
    %c0_i32 = arith.constant 0 : i32
    %c0_i32_0 = arith.constant 0 : i32
    %c0_i32_1 = arith.constant 0 : i32
    return %c0_i32, %c0_i32_0 : i32, i32
  }
  func.func @transform_2(%arg0: i32) -> (i32, i32) {
    %c0_i32 = arith.constant 0 : i32
    %c0_i32_0 = arith.constant 0 : i32
    %c0_i32_1 = arith.constant 0 : i32
    return %c0_i32, %c0_i32_0 : i32, i32
  }
  func.func @transform_3(%arg0: i32) -> (i32, i32) {
    %c0_i32 = arith.constant 0 : i32
    %c0_i32_0 = arith.constant 0 : i32
    %c0_i32_1 = arith.constant 0 : i32
    return %c0_i32, %c0_i32_0 : i32, i32
  }
  func.func @transform_4(%arg0: i32) -> (i32, i32) {
    %c0_i32 = arith.constant 0 : i32
    %c0_i32_0 = arith.constant 0 : i32
    %c0_i32_1 = arith.constant 0 : i32
    return %c0_i32, %c0_i32_0 : i32, i32
  }
  func.func @transform_5(%arg0: i32) -> (i32, i32) {
    %c0_i32 = arith.constant 0 : i32
    %c0_i32_0 = arith.constant 0 : i32
    %c0_i32_1 = arith.constant 0 : i32
    return %c0_i32, %c0_i32_0 : i32, i32
  }
  func.func @transform_6(%arg0: i32) -> (i32, i32) {
    %c0_i32 = arith.constant 0 : i32
    %c0_i32_0 = arith.constant 0 : i32
    %c0_i32_1 = arith.constant 0 : i32
    return %c0_i32, %c0_i32_0 : i32, i32
  }
  func.func @transform_7(%arg0: i32) -> (i32, i32) {
    %c0_i32 = arith.constant 0 : i32
    %c0_i32_0 = arith.constant 0 : i32
    return %arg0, %c0_i32 : i32, i32
  }
}

</mosaic_0001>

<bundles_post_ra>
// kernel: tile.18
= control target key start
LH: loop header
LB: loop body
LE: loop exit
PB: predicated region body
PF: predicated region fallthrough
CT: control target
= control target key end

     0   :  { %s22_s0 = inlined_call_operand.vmem [shape: f32[32], index: 0, kind: input, shape index: {}]   ;;  %s23_s1 = inlined_call_operand.vmem [shape: f32[4,32], index: 1, kind: output, shape index: {}]  }
   0x1   :  { %v4_v0 = vld [vmem:[%s22_s0] ss:$0 sm:$0xff] }
   0x2   :  { %5 = vst [vmem:[%s23_s1] sm:$0xf] %v4_v0 }

// kernel: tile.19
= control target key start
LH: loop header
LB: loop body
LE: loop exit
PB: predicated region body
PF: predicated region fallthrough
CT: control target
= control target key end

     0   :  { %vm7_vm0 = vcmask 261120   ;;  %s37_s8 = smov 32   ;;  %s38_s9 = smov 64   ;;  %vm13_vm1 = vcmask 1048320   ;;  %vm19_vm2 = vcmask 785920   ;;  %vm25_vm3 = vcmask 523520   ;;  %s55_s0 = inlined_call_operand.vmem [shape: f32[4,32], index: 0, kind: input, shape index: {}]   ;;  %s56_s1 = inlined_call_operand.vmem [shape: f32[1,128], index: 1, kind: output, shape index: {}]  }
   0x1   :  { %v4_v0 = vld [vmem:[%s55_s0] sm:$0xf]  ;;  %s36_s0 = smov 96  }
   0x2   :  { %5 = vst [vmem:[#allocation1] sm:$0xf] %v4_v0 }
   0x9   :  { %v10_v1 = vld [vmem:[#allocation1 + $0x3] sm:$0x1]   ;;  %v22_v2 = vld [vmem:[#allocation1 + $0x1] sm:$0x1]   ;;  %v6_v3 = vld [vmem:[#allocation1] sm:$0x1]  }
   0xa   :  { %11 = vrot.lane.b32.xlu0 %v10_v1, %s36_s0  ;;  %23 = vrot.lane.b32.xlu1 %v22_v2, %s37_s8  ;;  %v16_v4 = vld [vmem:[#allocation1 + $0x2] sm:$0x1]   ;;  %8 = vst.msk [vmem:[#allocation0] sm:$0x1] %vm7_vm0, %v6_v3  }
   0xe   :  { %17 = vrot.lane.b32.xlu0 %v16_v4, %s38_s9 }
  0x7c   :  { %v12_v5 = vpop.permute.xlu0 %11   ;;  %v24_v6 = vpop.permute.xlu1 %23  }
  0x7d   :  { %14 = vst.msk [vmem:[#allocation0] sm:$0x1] %vm13_vm1, %v12_v5  }
  0x80   :  { %v18_v7 = vpop.permute.xlu0 %17  }
  0x81   :  { %20 = vst.msk [vmem:[#allocation0] sm:$0x1] %vm19_vm2, %v18_v7  }
  0x82   :  { %26 = vst.msk [vmem:[#allocation0] sm:$0x1] %vm25_vm3, %v24_v6  }
  0x89   :  { %v30_v8 = vld [vmem:[#allocation0] sm:$0x1] }
  0x8a   :  { %32 = vst [vmem:[%s56_s1] sm:$0x1] %v30_v8 }

// kernel: message_passing_exter.1
= control target key start
LH: loop header
LB: loop body
LE: loop exit
PB: predicated region body
PF: predicated region fallthrough
CT: control target
= control target key end

     0   :  { %s1035_s24 = smov 0   ;;  %s1243_s0 = inlined_call_operand.vmem [shape: f32[32,128], index: 0, kind: input, shape index: {}]   ;;  %s1244_s1 = inlined_call_operand.vmem [shape: f32[16,128], index: 1, kind: input, shape index: {}]   ;;  %s1245_s2 = inlined_call_operand.vmem [shape: f32[128,128], index: 2, kind: input, shape index: {}]   ;;  %s1246_s3 = inlined_call_operand.vmem [shape: f32[128,128], index: 3, kind: input, shape index: {}]   ;;  %s1247_s4 = inlined_call_operand.vmem [shape: f32[1,128], index: 4, kind: input, shape index: {}]   ;;  %s1248_s5 = inlined_call_operand.vmem [shape: f32[1,128], index: 5, kind: input, shape index: {}]   ;;  %s1249_s6 = inlined_call_operand.vmem [shape: f32[1,128], index: 6, kind: input, shape index: {}]   ;;  %s1250_s7 = inlined_call_operand.vmem [shape: f32[32,128], index: 7, kind: output, shape index: {}]  }
   0x1 LB: > { %s771_s25 = sadd.s32 4294967295, %s990_s24   ;;  %p775_p0 = scmp.ge.s32.totalorder %s990_s24, 1  ;;  %s990_s24 = sphi %s1035_s24, %s17_s24  }
   0x2   : > { %p238_p1 = scmp.lt.s32.totalorder %s990_s24, 3 }
   0x4   : > { %p239_p2 = pnand %p775_p0, %p238_p1 }
   0x5   : > { %s776_s26 = sshll.u32 (!%p239_p2), %s771_s25, 1  ;;  %v341_v0 = vld [vmem:[%s1245_s2] sm:$0xff] (!%p239_p2)  ;;  %v342_v1 = vld [vmem:[%s1245_s2 + $0x8] sm:$0xff] (!%p239_p2)  ;;  %v343_v6 = vld [vmem:[%s1245_s2 + $0x10] sm:$0xff] (!%p239_p2)  ;;  %vm288_vm0 = vcmask (!%p239_p2), 1043456   ;;  %vm293_vm1 = vcmask (!%p239_p2), 1046528  }
   0x6   : > { %242 = sbr.rel (%p239_p2) target bundleno = 792 (0x318), region = 48  ;;  %p271_p3 = scmp.lt.s32.totalorder (!%p239_p2), %s776_s26, 3  ;;  %v357_v2 = vld [vmem:[%s1246_s3] sm:$0xff] (!%p239_p2)  ;;  %v358_v3 = vld [vmem:[%s1246_s3 + $0x8] sm:$0xff] (!%p239_p2)  ;;  %v923_v4 = vpack.c.bf16 (!%p239_p2), %v342_v1, %v341_v0  ;;  %v344_v7 = vld [vmem:[%s1245_s2 + $0x18] sm:$0xff] (!%p239_p2)  ;;  %vm302_vm2 = vcmask (!%p239_p2), 1040384  }
   0x7   : > { %v891_v5 = vpack.c.bf16 (!%p239_p2), %v358_v3, %v357_v2  ;;  %v359_v8 = vld [vmem:[%s1246_s3 + $0x10] sm:$0xff] (!%p239_p2)  ;;  %v927_v9 = vpack.c.bf16 (!%p239_p2), %v344_v7, %v343_v6  ;;  %v360_v10 = vld [vmem:[%s1246_s3 + $0x18] sm:$0xff] (!%p239_p2)  ;;  %v345_v11 = vld [vmem:[%s1245_s2 + $0x20] sm:$0xff] (!%p239_p2)  ;;  %s992_s23 = smov (!%p239_p2), 64   ;;  %vm328_vm3 = vcmask (!%p239_p2), 261120   ;;  %vm331_vm4 = vcmask (!%p239_p2), 523264  }
   0x8   : > { %v346_v12 = vld [vmem:[%s1245_s2 + $0x28] sm:$0xff] (!%p239_p2)  ;;  %924 = vmatprep.subr.bf16.mxu0 (!%p239_p2), %v923_v4  ;;  %v895_v13 = vpack.c.bf16 (!%p239_p2), %v360_v10, %v359_v8  ;;  %v361_v14 = vld [vmem:[%s1246_s3 + $0x20] sm:$0xff] (!%p239_p2)  ;;  %v347_v17 = vld [vmem:[%s1245_s2 + $0x30] sm:$0xff] (!%p239_p2)  ;;  %vm334_vm5 = vcmask (!%p239_p2), 785408   ;;  %s993_s19 = smov (!%p239_p2), 96   ;;  %s994_s20 = smov (!%p239_p2), 32  }
   0x9   : > { %892 = vmatprep.subr.bf16.mxu1 (!%p239_p2), %v891_v5  ;;  %v362_v15 = vld [vmem:[%s1246_s3 + $0x28] sm:$0xff] (!%p239_p2)  ;;  %926 = vmatpush3.bf16.msra.mxu0 (!%p239_p2), %v923_v4  ;;  %v931_v16 = vpack.c.bf16 (!%p239_p2), %v346_v12, %v345_v11  ;;  %v348_v18 = vld [vmem:[%s1245_s2 + $0x38] sm:$0xff] (!%p239_p2)  ;;  %v363_v19 = vld [vmem:[%s1246_s3 + $0x30] sm:$0xff] (!%p239_p2) }
   0xa   : > { %894 = vmatpush3.bf16.msra.mxu1 (!%p239_p2), %v891_v5  ;;  %928 = vmatprep.subr.bf16.mxu0 (!%p239_p2), %v927_v9  ;;  %v899_v22 = vpack.c.bf16 (!%p239_p2), %v362_v15, %v361_v14  ;;  %v364_v23 = vld [vmem:[%s1246_s3 + $0x38] sm:$0xff] (!%p239_p2)  ;;  %v935_v30 = vpack.c.bf16 (!%p239_p2), %v348_v18, %v347_v17  ;;  %v349_v32 = vld [vmem:[%s1245_s2 + $0x40] sm:$0xff] (!%p239_p2)  ;;  %v350_v33 = vld [vmem:[%s1245_s2 + $0x48] sm:$0xff] (!%p239_p2) }
   0xb   : > { %896 = vmatprep.subr.bf16.mxu1 (!%p239_p2), %v895_v13  ;;  %v903_v31 = vpack.c.bf16 (!%p239_p2), %v364_v23, %v363_v19  ;;  %v365_v34 = vld [vmem:[%s1246_s3 + $0x40] sm:$0xff] (!%p239_p2)  ;;  %v366_v35 = vld [vmem:[%s1246_s3 + $0x48] sm:$0xff] (!%p239_p2)  ;;  %v939_v40 = vpack.c.bf16 (!%p239_p2), %v350_v33, %v349_v32  ;;  %v351_v42 = vld [vmem:[%s1245_s2 + $0x50] sm:$0xff] (!%p239_p2) }
   0xc   : > { %v907_v41 = vpack.c.bf16 (!%p239_p2), %v366_v35, %v365_v34  ;;  %v352_v43 = vld [vmem:[%s1245_s2 + $0x58] sm:$0xff] (!%p239_p2)  ;;  %v367_v44 = vld [vmem:[%s1246_s3 + $0x50] sm:$0xff] (!%p239_p2)  ;;  %v353_v50 = vld [vmem:[%s1245_s2 + $0x60] sm:$0xff] (!%p239_p2) }
   0xd   : > { %s1252_s26 = smov (!%p271_p3, %s776_s26), 3  ;;  %930 = vmatpush3.bf16.msra.mxu0 %v927_v9  ;;  %v368_v45 = vld [vmem:[%s1246_s3 + $0x58] sm:$0xff]  ;;  %v943_v48 = vpack.c.bf16 %v352_v43, %v351_v42  ;;  %v354_v51 = vld [vmem:[%s1245_s2 + $0x68] sm:$0xff]  ;;  %v369_v52 = vld [vmem:[%s1246_s3 + $0x60] sm:$0xff] }
   0xe   : > { %s777_s30 = sshll.u32 %s1252_s26, 3  ;;  %898 = vmatpush3.bf16.msra.mxu1 %v895_v13  ;;  %932 = vmatprep.subr.bf16.mxu0 %v931_v16  ;;  %v911_v49 = vpack.c.bf16 %v368_v45, %v367_v44  ;;  %v370_v53 = vld [vmem:[%s1246_s3 + $0x68] sm:$0xff]  ;;  %v947_v54 = vpack.c.bf16 %v354_v51, %v353_v50  ;;  %v355_v56 = vld [vmem:[%s1245_s2 + $0x70] sm:$0xff]  ;;  %v356_v57 = vld [vmem:[%s1245_s2 + $0x78] sm:$0xff] }
   0xf   : > { %s274_s10 = scalar_lea.vmem %s1243_s0, %s777_s30  ;;  %900 = vmatprep.subr.bf16.mxu1 %v899_v22  ;;  %v915_v55 = vpack.c.bf16 %v370_v53, %v369_v52  ;;  %v371_v58 = vld [vmem:[%s1246_s3 + $0x70] sm:$0xff]  ;;  %v372_v59 = vld [vmem:[%s1246_s3 + $0x78] sm:$0xff]  ;;  %v951_v60 = vpack.c.bf16 %v356_v57, %v355_v56  ;;  %v338_v4 = vld [vmem:[%s1244_s1 + $0x8] sm:$0xff]  ;;  %s280_s29 = scalar_lea.vmem %s1250_s7, %s777_s30 }
  0x10   : > { %v282_v20 = vld [vmem:[%s274_s10] sm:$0xff]  ;;  %v1096_v21 = vld [vmem:[%s274_s10 + $0x8] sm:$0xff]  ;;  %v919_v61 = vpack.c.bf16 %v372_v59, %v371_v58 }
  0x11   : > { %v285_v24 = vrot.slane %v1096_v21, 4  ;;  %v289_v25 = vrot.slane %v282_v20, 4  ;;  %v294_v26 = vrot.slane %v282_v20, 1  ;;  %v295_v27 = vrot.slane %v1096_v21, 1  ;;  %888 = vmatprep.mubr.f32.mxu0 %v282_v20  ;;  %934 = vmatpush3.bf16.msra.mxu0 %v931_v16  ;;  %v337_v5 = vld [vmem:[%s1244_s1] sm:$0xff] }
  0x12   : > { %v300_v38 = vrot.slane %v1096_v21, 7  ;;  %v303_v39 = vrot.slane %v282_v20, 7  ;;  %902 = vmatpush3.bf16.msra.mxu1 %v899_v22  ;;  %936 = vmatprep.subr.bf16.mxu0 %v935_v30  ;;  %v780_v17 = vld [vmem:[%s1247_s4] ss:$0 sm:$0xff] }
  0x13   : > { %v292_v28 = vsel %vm288_vm0, %v285_v24, %v289_v25  ;;  %v290_v29 = vsel %vm288_vm0, %v289_v25, %v285_v24  ;;  %v296_v36 = vsel %vm293_vm1, %v294_v26, %v295_v27  ;;  %v299_v37 = vsel %vm293_vm1, %v295_v27, %v294_v26  ;;  %904 = vmatprep.subr.bf16.mxu1 %v903_v31 }
  0x14   : > { %308 = vrot.lane.b32.xlu0 %v292_v28, %s992_s23  ;;  %310 = vrot.lane.b32.xlu1 %v290_v29, %s992_s23  ;;  %v306_v46 = vsel %vm302_vm2, %v300_v38, %v303_v39  ;;  %v304_v47 = vsel %vm302_vm2, %v303_v39, %v300_v38 }
  0x15   : > { %938 = vmatpush3.bf16.msra.mxu0 %v935_v30 }
  0x16   : > { %906 = vmatpush3.bf16.msra.mxu1 %v903_v31  ;;  %940 = vmatprep.subr.bf16.mxu0 %v939_v40 }
  0x17   : > { %908 = vmatprep.subr.bf16.mxu1 %v907_v41 }
  0x18   : > { %315 = vrot.lane.b32.xlu0 %v296_v36, %s992_s23  ;;  %317 = vrot.lane.b32.xlu1 %v299_v37, %s992_s23 }
  0x19   : > { %942 = vmatpush3.bf16.msra.mxu0 %v939_v40 }
  0x1a   : > { %910 = vmatpush3.bf16.msra.mxu1 %v907_v41  ;;  %944 = vmatprep.subr.bf16.mxu0 %v943_v48 }
  0x1b   : > { %912 = vmatprep.subr.bf16.mxu1 %v911_v49 }
  0x1c   : > { %322 = vrot.lane.b32.xlu0 %v306_v46, %s992_s23  ;;  %324 = vrot.lane.b32.xlu1 %v304_v47, %s992_s23 }
  0x1d   : > { %946 = vmatpush3.bf16.msra.mxu0 %v943_v48 }
  0x1e   : > { %914 = vmatpush3.bf16.msra.mxu1 %v911_v49  ;;  %948 = vmatprep.subr.bf16.mxu0 %v947_v54 }
  0x1f   : > { %916 = vmatprep.subr.bf16.mxu1 %v915_v55 }
  0x21   : > { %950 = vmatpush3.bf16.msra.mxu0 %v947_v54 }
  0x22   : > { %918 = vmatpush3.bf16.msra.mxu1 %v915_v55  ;;  %952 = vmatprep.subr.bf16.mxu0 %v951_v60 }
  0x23   : > { %920 = vmatprep.subr.bf16.mxu1 %v919_v61 }
  0x25   : > { %954 = vmatpush3.bf16.msra.mxu0 %v951_v60 }
  0x26   : > { %922 = vmatpush3.bf16.msra.mxu1 %v919_v61 }
  0x28   : > { %889 = vmatmul.mubr.f32.vlgmr.msra.gmra.mrb[0].mxu0 %v1096_v21 }
  0x86   : > { %v309_v62 = vpop.permute.xlu0 %308  ;;  %v311_v63 = vpop.permute.xlu1 %310 }
  0x8a   : > { %v316_v0 = vpop.permute.xlu0 %315  ;;  %v318_v1 = vpop.permute.xlu1 %317 }
  0x8b   : > { %v329_v2 = vsel %vm328_vm3, %v309_v62, %v316_v0  ;;  %v330_v3 = vsel %vm328_vm3, %v311_v63, %v318_v1 }
  0x8c   : > { %v333_v7 = vsel %vm331_vm4, %v330_v3, %v309_v62  ;;  %v332_v9 = vsel %vm331_vm4, %v329_v2, %v311_v63 }
  0x8e   : > { %v323_v6 = vpop.permute.xlu0 %322  ;;  %v325_v8 = vpop.permute.xlu1 %324 }
  0x8f   : > { %v336_v10 = vsel %vm334_vm5, %v333_v7, %v325_v8  ;;  %v335_v11 = vsel %vm334_vm5, %v332_v9, %v323_v6 }
  0x90   : > { %v340_v12 = vmul.f32 %v338_v4, %v336_v10  ;;  %v339_v13 = vmul.f32 %v337_v5, %v335_v11 }
  0x92   : > { %853 = vmatprep.mubr.f32.mxu1 %v339_v13 }
  0x93   : > { %854 = vmatmul.mubr.f32.vlgmr.msra.gmra.mrb[0].mxu1 %v340_v12 }
  0xfb   : > { %v890_v14 = vpop.f32.mrb[0].mxu0 }
  0xfc   : > { %v514_v15 = vpop.f32.mrb[1].mxu0 }
 0x166   : > { %v855_v16 = vpop.f32.mrb[0].mxu1 }
 0x167   : > { %v520_v18 = vadd.f32 %v890_v14, %v855_v16  ;;  %v439_v19 = vpop.f32.mrb[1].mxu1 }
 0x168   : > { %v515_v20 = vadd.f32 %v514_v15, %v439_v19 }
 0x169   : > { %v531_v21 = vadd.f32 %v780_v17, %v520_v18 }
 0x16a   : > { %v530_v24 = vadd.f32 %v780_v17, %v515_v20 }
 0x16b   : > { %v1176_v22 = vmax.f32 %v531_v21, 0.0 }
 0x16c   : > { %v1184_v25 = vmax.f32 %v530_v24, 0.0 }
 0x16d   : > { %569 = vrot.lane.b32.xlu0 %v1176_v22, %s993_s19  ;;  %v537_v23 = vsel %vm328_vm3, %v1176_v22, 0.0  ;;  %v544_v28 = vmul.f32 %v1176_v22, %v1176_v22 }
 0x16e   : > { %538 = vadd.xlane.f32.xlu1 %v537_v23  ;;  %v543_v26 = vmul.f32 %v1184_v25, %v1184_v25  ;;  %v534_v27 = vsel %vm328_vm3, %v1184_v25, 0.0 }
 0x16f   : > { %v548_v29 = vsel %vm328_vm3, %v544_v28, 0.0 }
 0x170   : > { %v545_v37 = vsel %vm328_vm3, %v543_v26, 0.0 }
 0x171   : > { %611 = vrot.lane.b32.xlu0 %v1176_v22, %s992_s23 }
 0x175   : > { %651 = vrot.lane.b32.xlu0 %v1176_v22, %s994_s20 }
 0x179   : > { %609 = vrot.lane.b32.xlu0 %v1184_v25, %s992_s23 }
 0x17d   : > { %649 = vrot.lane.b32.xlu0 %v1184_v25, %s994_s20 }
 0x17f   : > { %567 = vrot.lane.b32.xlu1 %v1184_v25, %s993_s19 }
 0x183   : > { %663 = vrot.lane.b32.xlu1 %v543_v26, %s994_s20 }
 0x19c   : > { %535 = vadd.xlane.f32.xlu0 %v534_v27 }
 0x1b2   : > { %585 = vrot.lane.b32.xlu0 %v544_v28, %s993_s19 }
 0x1b6   : > { %625 = vrot.lane.b32.xlu0 %v544_v28, %s992_s23 }
 0x1d5   : > { %549 = vadd.xlane.f32.xlu0 %v548_v29 }
 0x1df   : > { %v570_v30 = vpop.permute.xlu0 %569 }
 0x1e0   : > { %v576_v38 = vsel %vm328_vm3, %v570_v30, 0.0 }
 0x1e3   : > { %v612_v31 = vpop.permute.xlu0 %611 }
 0x1e4   : > { %v618_v40 = vsel %vm328_vm3, %v612_v31, 0.0 }
 0x1e7   : > { %v652_v32 = vpop.permute.xlu0 %651 }
 0x1e8   : > { %v658_v33 = vsel %vm328_vm3, %v652_v32, 0.0 }
 0x1e9   : > { %659 = vadd.xlane.f32.xlu1 %v658_v33 }
 0x1eb   : > { %583 = vrot.lane.b32.xlu0 %v543_v26, %s993_s19  ;;  %v610_v39 = vpop.permute.xlu0 %609 }
 0x1ec   : > { %v615_v41 = vsel %vm328_vm3, %v610_v39, 0.0 }
 0x1ef   : > { %623 = vrot.lane.b32.xlu0 %v543_v26, %s992_s23  ;;  %v650_v42 = vpop.permute.xlu0 %649 }
 0x1f0   : > { %v655_v43 = vsel %vm328_vm3, %v650_v42, 0.0 }
 0x1f3   : > { %665 = vrot.lane.b32.xlu0 %v544_v28, %s994_s20 }
 0x1fb   : > { %v539_v34 = vpop.xlane.xlu1 %538 }
 0x1fc   : > { %v542_v49 = vmul.f32 0.03125, %v539_v34 }
 0x1fe   : > { %v554_v51 = vmul.f32 %v542_v49, %v542_v49  ;;  %v558_v63 = vsub.f32 %v1176_v22, %v542_v49 }
 0x1ff   : > { %v568_v35 = vpop.permute.xlu1 %567 }
 0x200   : > { %v573_v36 = vsel %vm328_vm3, %v568_v35, 0.0 }
 0x201   : > { %574 = vadd.xlane.f32.xlu1 %v573_v36 }
 0x203   : > { %v664_v59 = vpop.permute.xlu1 %663 }
 0x204   : > { %v669_v61 = vsel %vm328_vm3, %v664_v59, 0.0 }
 0x212   : > { %546 = vadd.xlane.f32.xlu0 %v545_v37 }
 0x216   : > { %577 = vadd.xlane.f32.xlu0 %v576_v38 }
 0x21a   : > { %619 = vadd.xlane.f32.xlu0 %v618_v40 }
 0x21e   : > { %616 = vadd.xlane.f32.xlu0 %v615_v41 }
 0x222   : > { %656 = vadd.xlane.f32.xlu0 %v655_v43 }
 0x229   : > { %v536_v44 = vpop.xlane.xlu0 %535 }
 0x22a   : > { %v541_v16 = vmul.f32 0.03125, %v536_v44 }
 0x22c   : > { %v553_v28 = vmul.f32 %v541_v16, %v541_v16 }
 0x22d   : > { %v586_v45 = vpop.permute.xlu0 %585 }
 0x22e   : > { %v592_v46 = vsel %vm328_vm3, %v586_v45, 0.0 }
 0x22f   : > { %593 = vadd.xlane.f32.xlu0 %v592_v46 }
 0x231   : > { %v626_v47 = vpop.permute.xlu0 %625 }
 0x232   : > { %v632_v48 = vsel %vm328_vm3, %v626_v47, 0.0 }
 0x233   : > { %633 = vadd.xlane.f32.xlu1 %v632_v48 }
 0x262   : > { %v550_v50 = vpop.xlane.xlu0 %549 }
 0x263   : > { %v552_v52 = vmul.f32 0.03125, %v550_v50 }
 0x265   : > { %v556_v53 = vsub.f32 %v552_v52, %v554_v51 }
 0x266   : > { %v584_v54 = vpop.permute.xlu0 %583 }
 0x267   : > { %v560_v55 = vadd.f32 1e-05, %v556_v53  ;;  %v589_v56 = vsel %vm328_vm3, %v584_v54, 0.0 }
 0x268   : > { %590 = vadd.xlane.f32.xlu1 %v589_v56 }
 0x269   : > { %968 = vrsqrt.f32 %v560_v55 }
 0x26a   : > { %v624_v57 = vpop.permute.xlu0 %623 }
 0x26b   : > { %v629_v58 = vsel %vm328_vm3, %v624_v57, 0.0 }
 0x26c   : > { %630 = vadd.xlane.f32.xlu0 %v629_v58 }
 0x26e   : > { %v666_v60 = vpop.permute.xlu0 %665 }
 0x26f   : > { %v672_v62 = vsel %vm328_vm3, %v666_v60, 0.0 }
 0x270   : > { %670 = vadd.xlane.f32.xlu0 %v669_v61  ;;  %673 = vadd.xlane.f32.xlu1 %v672_v62  ;;  %v557_v62 = vsub.f32 %v1184_v25, %v541_v16 }
 0x273   : > { %v969_v0 = vpop.eup %968 }
 0x274   : > { %v1213_v1 = vmul.f32 %v969_v0, %v558_v63 }
 0x276   : > { %v660_v6 = vpop.xlane.xlu1 %659 }
 0x277   : > { %v662_v30 = vmul.f32 0.03125, %v660_v6 }
 0x279   : > { %v678_v40 = vmul.f32 %v662_v30, %v662_v30 }
 0x28e   : > { %v575_v8 = vpop.xlane.xlu1 %574 }
 0x28f   : > { %v579_v14 = vmul.f32 0.03125, %v575_v8 }
 0x291   : > { %v597_v23 = vmul.f32 %v579_v14, %v579_v14  ;;  %v601_v57 = vsub.f32 %v1184_v25, %v579_v14 }
 0x29f   : > { %v547_v2 = vpop.xlane.xlu0 %546 }
 0x2a0   : > { %v551_v19 = vmul.f32 0.03125, %v547_v2  ;;  %v682_v2 = vsub.f32 %v1176_v22, %v662_v30 }
 0x2a2   : > { %v555_v31 = vsub.f32 %v551_v19, %v553_v28 }
 0x2a3   : > { %v578_v3 = vpop.xlane.xlu0 %577 }
 0x2a4   : > { %v580_v10 = vmul.f32 0.03125, %v578_v3  ;;  %v559_v41 = vadd.f32 1e-05, %v555_v31 }
 0x2a6   : > { %v598_v17 = vmul.f32 %v580_v10, %v580_v10  ;;  %v602_v55 = vsub.f32 %v1176_v22, %v580_v10 }
 0x2a7   : > { %v620_v4 = vpop.xlane.xlu0 %619 }
 0x2a8   : > { %v622_v12 = vmul.f32 0.03125, %v620_v4 }
 0x2aa   : > { %v638_v18 = vmul.f32 %v622_v12, %v622_v12  ;;  %v642_v58 = vsub.f32 %v1176_v22, %v622_v12 }
 0x2ab   : > { %v617_v5 = vpop.xlane.xlu0 %616 }
 0x2ac   : > { %v621_v24 = vmul.f32 0.03125, %v617_v5 }
 0x2ae   : > { %v637_v35 = vmul.f32 %v621_v24, %v621_v24  ;;  %v641_v60 = vsub.f32 %v1184_v25, %v621_v24 }
 0x2af   : > { %v657_v7 = vpop.xlane.xlu0 %656 }
 0x2b0   : > { %v661_v32 = vmul.f32 0.03125, %v657_v7 }
 0x2b2   : > { %v677_v42 = vmul.f32 %v661_v32, %v661_v32  ;;  %v681_v6 = vsub.f32 %v1184_v25, %v661_v32  ;;  %v782_v25 = vld [vmem:[%s1249_s6] ss:$0 sm:$0xff] }
 0x2bc   : > { %v594_v9 = vpop.xlane.xlu0 %593 }
 0x2bd   : > { %v596_v13 = vmul.f32 0.03125, %v594_v9  ;;  %v781_v9 = vld [vmem:[%s1248_s5] ss:$0 sm:$0xff] }
 0x2bf   : > { %v600_v20 = vsub.f32 %v596_v13, %v598_v17 }
 0x2c0   : > { %v634_v11 = vpop.xlane.xlu1 %633 }
 0x2c1   : > { %v636_v15 = vmul.f32 0.03125, %v634_v11  ;;  %v604_v33 = vadd.f32 1e-05, %v600_v20 }
 0x2c3   : > { %v640_v26 = vsub.f32 %v636_v15, %v638_v18  ;;  %970 = vrsqrt.f32 %v604_v33 }
 0x2c5   : > { %v644_v36 = vadd.f32 1e-05, %v640_v26 }
 0x2c7   : > { %972 = vrsqrt.f32 %v644_v36 }
 0x2cd   : > { %v971_v52 = vpop.eup %970 }
 0x2ce   : > { %v608_v61 = vmul.f32 %v971_v52, %v602_v55 }
 0x2d0   : > { %v690_v8 = vsel %vm328_vm3, %v1213_v1, %v608_v61 }
 0x2d1   : > { %v973_v53 = vpop.eup %972 }
 0x2d2   : > { %v648_v63 = vmul.f32 %v973_v53, %v642_v58 }
 0x2d4   : > { %v692_v11 = vsel %vm331_vm4, %v690_v8, %v648_v63 }
 0x2f5   : > { %v591_v21 = vpop.xlane.xlu1 %590 }
 0x2f6   : > { %v595_v27 = vmul.f32 0.03125, %v591_v21 }
 0x2f8   : > { %v599_v29 = vsub.f32 %v595_v27, %v597_v23 }
 0x2f9   : > { %v631_v34 = vpop.xlane.xlu0 %630 }
 0x2fa   : > { %v635_v37 = vmul.f32 0.03125, %v631_v34  ;;  %v603_v38 = vadd.f32 1e-05, %v599_v29 }
 0x2fc   : > { %v639_v39 = vsub.f32 %v635_v37, %v637_v35  ;;  %974 = vrsqrt.f32 %v603_v38 }
 0x2fd   : > { %v674_v43 = vpop.xlane.xlu1 %673  ;;  %v671_v44 = vpop.xlane.xlu0 %670 }
 0x2fe   : > { %v643_v45 = vadd.f32 1e-05, %v639_v39  ;;  %v676_v46 = vmul.f32 0.03125, %v674_v43  ;;  %v675_v47 = vmul.f32 0.03125, %v671_v44 }
 0x300   : > { %976 = vrsqrt.f32 %v643_v45  ;;  %v680_v48 = vsub.f32 %v676_v46, %v678_v40  ;;  %v679_v49 = vsub.f32 %v675_v47, %v677_v42 }
 0x301   : > { %978 = vrsqrt.f32 %v559_v41 }
 0x302   : > { %v684_v50 = vadd.f32 1e-05, %v680_v48  ;;  %v683_v51 = vadd.f32 1e-05, %v679_v49 }
 0x304   : > { %980 = vrsqrt.f32 %v684_v50 }
 0x305   : > { %982 = vrsqrt.f32 %v683_v51 }
 0x306   : > { %v975_v54 = vpop.eup %974 }
 0x307   : > { %v607_v0 = vmul.f32 %v975_v54, %v601_v57 }
 0x30a   : > { %v977_v56 = vpop.eup %976 }
 0x30b   : > { %v979_v59 = vpop.eup %978  ;;  %v647_v3 = vmul.f32 %v977_v56, %v641_v60 }
 0x30c   : > { %v563_v5 = vmul.f32 %v979_v59, %v557_v62 }
 0x30e   : > { %v981_v4 = vpop.eup %980  ;;  %v689_v12 = vsel %vm328_vm3, %v563_v5, %v607_v0 }
 0x30f   : > { %v983_v7 = vpop.eup %982  ;;  %v688_v10 = vmul.f32 %v981_v4, %v682_v2  ;;  %v691_v13 = vsel %vm331_vm4, %v689_v12, %v647_v3 }
 0x310   : > { %v687_v22 = vmul.f32 %v983_v7, %v681_v6 }
 0x311   : > { %v694_v14 = vsel %vm334_vm5, %v692_v11, %v688_v10 }
 0x312   : > { %v703_v15 = vmul.f32 %v781_v9, %v694_v14  ;;  %v693_v1 = vsel %vm334_vm5, %v691_v13, %v687_v22 }
 0x313   : > { %v702_v16 = vmul.f32 %v781_v9, %v693_v1 }
 0x314   : > { %v712_v17 = vadd.f32 %v782_v25, %v703_v15 }
 0x315   : > { %v711_v18 = vadd.f32 %v782_v25, %v702_v16 }
 0x316   : > { %714 = vst [vmem:[%s280_s29 + $0x8] sm:$0xff] %v712_v17 }
 0x317   : > { %713 = vst [vmem:[%s280_s29] sm:$0xff] %v711_v18 }
 0x318 PF: > { %s17_s24 = sadd.s32 1, %s990_s24  }
 0x319   : > { %p14_p4 = scmp.ge.s32.totalorder %s17_s24, 4  }
 0x31b   :  { %16 = sbr.rel (!%p14_p4) target bundleno = 1 (0x1), region = 78 }

</bundles_post_ra>
